<compile_context>
chip_gen: v7x
topology: tpu7x:2x2x1
jax: 0.10.0
libtpu: 0.0.40
codegen_flags: <defaults>
</compile_context>

<pallas_src>
import math

import jax
import jax.numpy as jnp
from jax.experimental import pallas as pl
from jax.experimental.pallas import tpu as pltpu


def _conv_relu_pool_kernel(t_ref, w_ref, b_ref, o_ref):
    # t_ref: (1, TPH, 6, Wp, 6*Cin) bf16 -- per pooled output (ph, pw): its 6x6 stride-4 input
    #        window; dim 2 is the window row s, the last dim is (window col r, cin).
    # w_ref: (4, 4*Cin, Cout)       bf16 -- w_ref[kh, kw*Cin + c, co] = W[co, c, kh, kw]; resident.
    # b_ref: (1, Cout)              f32  -- resident.
    # o_ref: (1, TPH, Wp, Cout)
    _, tph, _, wp, six_cin = t_ref.shape
    cin = six_cin // 6
    cout = w_ref.shape[2]
    tp = tph * wp

    tw = t_ref[0]                                  # (TPH, 6, Wp, 6*Cin)
    wk = [w_ref[kh] for kh in range(4)]            # each (4*Cin, Cout), hoisted out of the loops

    m = None
    for i in range(2):                             # pool-window row
        for j in range(2):                         # pool-window col
            y = None
            for kh in range(4):                    # conv kernel row; contraction split as 4*(4*Cin)
                # contiguous VMEM slice: rows s = 2*i + kh, cols r in [2*j, 2*j+4), all cin
                a = tw[:, 2 * i + kh, :, 2 * j * cin:(2 * j + 4) * cin]     # (TPH, Wp, 4*Cin)
                d = jnp.dot(a.reshape(tp, 4 * cin), wk[kh],
                            preferred_element_type=jnp.float32)            # (TP, Cout) f32
                y = d if y is None else y + d
            # MaxPool2d(2,2) == elementwise max over the 4 window positions, done BEFORE
            # bias/LeakyReLU (exact: x -> leaky(x + b) is monotone non-decreasing).
            m = y if m is None else jnp.maximum(m, y)
    m = m + b_ref[...]                             # bias added once per output element
    m = jnp.maximum(m, 0.2 * m)                    # LeakyReLU(0.2)
    o_ref[0] = m.reshape(tph, wp, cout).astype(o_ref.dtype)


def _round_up(v, m):
    return ((v + m - 1) // m) * m


def _vmem_limit_bytes():
    # 64 MiB scoped limit on 128-MiB parts (v5e/v6e); 28 MiB on v7x (64 MiB physical VMEM).
    try:
        cap = int(pltpu.get_tpu_info().vmem_capacity_bytes)
    except Exception:
        cap = 64 * 1024 * 1024
    return (64 if cap >= 100 * 1024 * 1024 else 28) * 1024 * 1024


def _tile_vmem_bytes(tph, Wp, Cin, Cout):
    # Per-grid-step working set, with (8/16, 128) VMEM tile padding and the in-kernel f32
    # intermediates included (perf-review fix).
    win = tph * 6 * _round_up(Wp, 16) * _round_up(6 * Cin, 128) * 2          # bf16 window block
    out = tph * _round_up(Wp, 8) * _round_up(Cout, 128) * 4                  # f32 output block
    wgt = 4 * _round_up(4 * Cin, 16) * _round_up(Cout, 128) * 2              # bf16 weights
    tp = tph * _round_up(Wp, 8)
    inter = (2 * tp * _round_up(Cout, 128) * 4                               # y + running max (f32)
             + 2 * tp * _round_up(4 * Cin, 128) * 2)                         # live bf16 patch slices
    # window/output/weight blocks are double-buffered by the pipeline; win//2 for the loaded copy.
    return int((2 * win + win // 2 + 2 * out + 2 * wgt + inter) * 1.15)


def _pick_tph(N, Hp, Wp, Cin, Cout, budget):
    divisors = [d for d in range(1, Hp + 1) if Hp % d == 0]
    fitting = [d for d in divisors if _tile_vmem_bytes(d, Wp, Cin, Cout) <= budget] or [1]
    preferred = [d for d in fitting if N * (Hp // d) >= 4]   # keep >= 4 grid steps (v7x megacore)
    return max(preferred) if preferred else max(fitting)


def conv_relu_pool(x, weight, bias, *, compute_dtype=jnp.bfloat16):
    """Conv2d(k=4, s=2, p=1) -> LeakyReLU(0.2) -> MaxPool2d(2, 2). NCHW in / NCHW out."""
    N, Cin, H, W = x.shape
    Cout = weight.shape[0]
    assert weight.shape == (Cout, Cin, 4, 4)
    Ho = (H + 2 - 4) // 2 + 1              # conv output (k=4, s=2, p=1)
    Wo = (W + 2 - 4) // 2 + 1
    Hp, Wp = Ho // 2, Wo // 2              # MaxPool floor: odd trailing row/col dropped
    assert Hp >= 1 and Wp >= 1, "input too small for conv + pool"

    # --- compact window tensor (single slice/concat pass, 2.25x duplication) ------------------
    # twin[n, ph, s, pw, r*Cin + c] = xpad[n, 4*ph + s, 4*pw + r, c]
    xt = jnp.transpose(x, (0, 2, 3, 1)).astype(compute_dtype)       # NHWC, bf16
    xp = jnp.pad(xt, ((0, 0), (1, 1), (1, 1), (0, 0)))              # conv padding = 1
    planes = []
    for s in range(6):
        xs = xp[:, s: s + 4 * (Hp - 1) + 1: 4]                      # rows 4*ph + s  -> (N, Hp, W+2, Cin)
        cols = [xs[:, :, r: r + 4 * (Wp - 1) + 1: 4] for r in range(6)]   # cols 4*pw + r
        planes.append(jnp.concatenate(cols, axis=-1))               # (N, Hp, Wp, 6*Cin)
    twin = jnp.stack(planes, axis=2)                                # (N, Hp, 6, Wp, 6*Cin)

    # weight -> (kh, (kw, cin), cout); bias -> (1, cout) f32
    w_r = jnp.transpose(weight, (2, 3, 1, 0)).astype(compute_dtype).reshape(4, 4 * Cin, Cout)
    b_r = bias.astype(jnp.float32).reshape(1, Cout)

    vmem_limit = _vmem_limit_bytes()
    tph = _pick_tph(N, Hp, Wp, Cin, Cout, vmem_limit - 6 * 1024 * 1024)

    flops = 2 * N * Hp * Wp * 4 * (16 * Cin) * Cout
    bytes_accessed = int(twin.size * 2 + w_r.size * 2 + b_r.size * 4
                         + N * Hp * Wp * Cout * jnp.dtype(x.dtype).itemsize)

    out = pl.pallas_call(
        _conv_relu_pool_kernel,
        out_shape=jax.ShapeDtypeStruct((N, Hp, Wp, Cout), x.dtype),
        grid=(N, Hp // tph),
        in_specs=[
            pl.BlockSpec((1, tph, 6, Wp, 6 * Cin), lambda n, p: (n, p, 0, 0, 0)),
            pl.BlockSpec((4, 4 * Cin, Cout), lambda n, p: (0, 0, 0)),   # weight stays resident
            pl.BlockSpec((1, Cout), lambda n, p: (0, 0)),               # bias stays resident
        ],
        out_specs=pl.BlockSpec((1, tph, Wp, Cout), lambda n, p: (n, p, 0, 0)),
        compiler_params=pltpu.CompilerParams(
            dimension_semantics=("parallel", "parallel"),
            vmem_limit_bytes=vmem_limit),
        cost_estimate=pl.CostEstimate(
            flops=flops, transcendentals=0, bytes_accessed=bytes_accessed),
    )(twin, w_r, b_r)

    # small (N, Hp, Wp, Cout) -> NCHW (could be skipped if the consumer accepts NHWC)
    return jnp.transpose(out, (0, 3, 1, 2))


def _reference(x, weight, bias):
    # Reference matched to the kernel's numerics: bf16-rounded inputs, f32 accumulation.
    xr = x.astype(jnp.bfloat16).astype(jnp.float32)
    wr = weight.astype(jnp.bfloat16).astype(jnp.float32)
    y = jax.lax.conv_general_dilated(
        xr, wr, window_strides=(2, 2), padding=((1, 1), (1, 1)),
        dimension_numbers=("NCHW", "OIHW", "NCHW"),
        precision=jax.lax.Precision.HIGHEST)
    y = y + bias[None, :, None, None]
    y = jnp.where(y >= 0, y, 0.2 * y)
    y = jax.lax.reduce_window(y, -jnp.inf, jax.lax.max,
                              (1, 1, 2, 2), (1, 1, 2, 2), "VALID")
    return y


if __name__ == "__main__":
    key = jax.random.PRNGKey(0)
    k1, k2, k3 = jax.random.split(key, 3)

    N, Cin, H, W, Cout = 2, 4, 16, 16, 8
    x = jax.random.normal(k1, (N, Cin, H, W), jnp.float32)

    # deterministic synthetic params (PyTorch-style uniform fan-in init)
    fan_in = Cin * 4 * 4
    bound = 1.0 / math.sqrt(fan_in)
    weight = jax.random.uniform(k2, (Cout, Cin, 4, 4), jnp.float32, -bound, bound)
    bias = jax.random.uniform(k3, (Cout,), jnp.float32, -bound, bound)

    out = conv_relu_pool(x, weight, bias)
    jax.block_until_ready(out)

    assert out.shape == (N, Cout, H // 4, W // 4), out.shape
    ref = _reference(x, weight, bias)
    err = float(jnp.max(jnp.abs(out - ref)))
    assert jnp.allclose(out, ref, atol=1e-4, rtol=1e-4), err
    print("KERNEL_OK")
</pallas_src>

<mosaic_0001>
module attributes {stable_mosaic.version = 11 : i64} {
  func.func @_conv_relu_pool_kernel(%arg0: i32, %arg1: i32, %arg2: memref<1x2x6x4x24xbf16, #tpu.memory_space<vmem>>, %arg3: memref<4x16x8xbf16, #tpu.memory_space<vmem>>, %arg4: memref<1x8xf32, #tpu.memory_space<vmem>>, %arg5: memref<1x2x4x8xf32, #tpu.memory_space<vmem>>) attributes {dimension_semantics = [#tpu.dimension_semantics<parallel>, #tpu.dimension_semantics<parallel>], iteration_bounds = array<i64: 2, 2>, scalar_prefetch = 0 : i64, scratch_operands = 0 : i64, tpu.core_type = #tpu.core_type<tc>, window_params = [{transform_indices = @transform_0, window_bounds = array<i64: 1, 2, 6, 4, 24>}, {pipeline_mode = #tpu.pipeline_mode<synchronous>, transform_indices = @transform_1, window_bounds = array<i64: 4, 16, 8>}, {pipeline_mode = #tpu.pipeline_mode<synchronous>, transform_indices = @transform_2, window_bounds = array<i64: 1, 8>}, {transform_indices = @transform_3, window_bounds = array<i64: 1, 2, 4, 8>}]} {
    %c0 = arith.constant 0 : index
    %c0_0 = arith.constant 0 : index
    %c0_1 = arith.constant 0 : index
    %c0_2 = arith.constant 0 : index
    %c0_3 = arith.constant 0 : index
    %0 = vector.load %arg2[%c0, %c0_0, %c0_1, %c0_2, %c0_3] : memref<1x2x6x4x24xbf16, #tpu.memory_space<vmem>>, vector<1x2x6x4x24xbf16>
    %1 = vector.shape_cast %0 : vector<1x2x6x4x24xbf16> to vector<2x6x4x24xbf16>
    %c0_4 = arith.constant 0 : index
    %c0_5 = arith.constant 0 : index
    %c0_6 = arith.constant 0 : index
    %2 = vector.load %arg3[%c0_4, %c0_5, %c0_6] : memref<4x16x8xbf16, #tpu.memory_space<vmem>>, vector<1x16x8xbf16>
    %3 = vector.shape_cast %2 : vector<1x16x8xbf16> to vector<16x8xbf16>
    %c1 = arith.constant 1 : index
    %c0_7 = arith.constant 0 : index
    %c0_8 = arith.constant 0 : index
    %4 = vector.load %arg3[%c1, %c0_7, %c0_8] : memref<4x16x8xbf16, #tpu.memory_space<vmem>>, vector<1x16x8xbf16>
    %5 = vector.shape_cast %4 : vector<1x16x8xbf16> to vector<16x8xbf16>
    %c2 = arith.constant 2 : index
    %c0_9 = arith.constant 0 : index
    %c0_10 = arith.constant 0 : index
    %6 = vector.load %arg3[%c2, %c0_9, %c0_10] : memref<4x16x8xbf16, #tpu.memory_space<vmem>>, vector<1x16x8xbf16>
    %7 = vector.shape_cast %6 : vector<1x16x8xbf16> to vector<16x8xbf16>
    %c3 = arith.constant 3 : index
    %c0_11 = arith.constant 0 : index
    %c0_12 = arith.constant 0 : index
    %8 = vector.load %arg3[%c3, %c0_11, %c0_12] : memref<4x16x8xbf16, #tpu.memory_space<vmem>>, vector<1x16x8xbf16>
    %9 = vector.shape_cast %8 : vector<1x16x8xbf16> to vector<16x8xbf16>
    %10 = vector.extract_strided_slice %1 {offsets = [0, 0, 0, 0], sizes = [2, 1, 4, 16], strides = [1, 1, 1, 1]} : vector<2x6x4x24xbf16> to vector<2x1x4x16xbf16>
    %11 = vector.shape_cast %10 : vector<2x1x4x16xbf16> to vector<2x4x16xbf16>
    %12 = vector.shape_cast %11 : vector<2x4x16xbf16> to vector<8x16xbf16>
    %cst = arith.constant dense<0.000000e+00> : vector<8x8xf32>
    %13 = tpu.matmul %12, %3, %cst {dimension_numbers = #tpu.dot_dimension_numbers<[1], [0], [0], [1], [0, 0, 1, 1], [], []>} : vector<8x16xbf16>, vector<16x8xbf16>, vector<8x8xf32> -> vector<8x8xf32>
    %14 = vector.extract_strided_slice %1 {offsets = [0, 1, 0, 0], sizes = [2, 1, 4, 16], strides = [1, 1, 1, 1]} : vector<2x6x4x24xbf16> to vector<2x1x4x16xbf16>
    %15 = vector.shape_cast %14 : vector<2x1x4x16xbf16> to vector<2x4x16xbf16>
    %16 = vector.shape_cast %15 : vector<2x4x16xbf16> to vector<8x16xbf16>
    %cst_13 = arith.constant dense<0.000000e+00> : vector<8x8xf32>
    %17 = tpu.matmul %16, %5, %cst_13 {dimension_numbers = #tpu.dot_dimension_numbers<[1], [0], [0], [1], [0, 0, 1, 1], [], []>} : vector<8x16xbf16>, vector<16x8xbf16>, vector<8x8xf32> -> vector<8x8xf32>
    %18 = arith.addf %13, %17 : vector<8x8xf32>
    %19 = vector.extract_strided_slice %1 {offsets = [0, 2, 0, 0], sizes = [2, 1, 4, 16], strides = [1, 1, 1, 1]} : vector<2x6x4x24xbf16> to vector<2x1x4x16xbf16>
    %20 = vector.shape_cast %19 : vector<2x1x4x16xbf16> to vector<2x4x16xbf16>
    %21 = vector.shape_cast %20 : vector<2x4x16xbf16> to vector<8x16xbf16>
    %cst_14 = arith.constant dense<0.000000e+00> : vector<8x8xf32>
    %22 = tpu.matmul %21, %7, %cst_14 {dimension_numbers = #tpu.dot_dimension_numbers<[1], [0], [0], [1], [0, 0, 1, 1], [], []>} : vector<8x16xbf16>, vector<16x8xbf16>, vector<8x8xf32> -> vector<8x8xf32>
    %23 = arith.addf %18, %22 : vector<8x8xf32>
    %24 = vector.extract_strided_slice %1 {offsets = [0, 3, 0, 0], sizes = [2, 1, 4, 16], strides = [1, 1, 1, 1]} : vector<2x6x4x24xbf16> to vector<2x1x4x16xbf16>
    %25 = vector.shape_cast %24 : vector<2x1x4x16xbf16> to vector<2x4x16xbf16>
    %26 = vector.shape_cast %25 : vector<2x4x16xbf16> to vector<8x16xbf16>
    %cst_15 = arith.constant dense<0.000000e+00> : vector<8x8xf32>
    %27 = tpu.matmul %26, %9, %cst_15 {dimension_numbers = #tpu.dot_dimension_numbers<[1], [0], [0], [1], [0, 0, 1, 1], [], []>} : vector<8x16xbf16>, vector<16x8xbf16>, vector<8x8xf32> -> vector<8x8xf32>
    %28 = arith.addf %23, %27 : vector<8x8xf32>
    %29 = vector.extract_strided_slice %1 {offsets = [0, 0, 0, 8], sizes = [2, 1, 4, 16], strides = [1, 1, 1, 1]} : vector<2x6x4x24xbf16> to vector<2x1x4x16xbf16>
    %30 = vector.shape_cast %29 : vector<2x1x4x16xbf16> to vector<2x4x16xbf16>
    %31 = vector.shape_cast %30 : vector<2x4x16xbf16> to vector<8x16xbf16>
    %cst_16 = arith.constant dense<0.000000e+00> : vector<8x8xf32>
    %32 = tpu.matmul %31, %3, %cst_16 {dimension_numbers = #tpu.dot_dimension_numbers<[1], [0], [0], [1], [0, 0, 1, 1], [], []>} : vector<8x16xbf16>, vector<16x8xbf16>, vector<8x8xf32> -> vector<8x8xf32>
    %33 = vector.extract_strided_slice %1 {offsets = [0, 1, 0, 8], sizes = [2, 1, 4, 16], strides = [1, 1, 1, 1]} : vector<2x6x4x24xbf16> to vector<2x1x4x16xbf16>
    %34 = vector.shape_cast %33 : vector<2x1x4x16xbf16> to vector<2x4x16xbf16>
    %35 = vector.shape_cast %34 : vector<2x4x16xbf16> to vector<8x16xbf16>
    %cst_17 = arith.constant dense<0.000000e+00> : vector<8x8xf32>
    %36 = tpu.matmul %35, %5, %cst_17 {dimension_numbers = #tpu.dot_dimension_numbers<[1], [0], [0], [1], [0, 0, 1, 1], [], []>} : vector<8x16xbf16>, vector<16x8xbf16>, vector<8x8xf32> -> vector<8x8xf32>
    %37 = arith.addf %32, %36 : vector<8x8xf32>
    %38 = vector.extract_strided_slice %1 {offsets = [0, 2, 0, 8], sizes = [2, 1, 4, 16], strides = [1, 1, 1, 1]} : vector<2x6x4x24xbf16> to vector<2x1x4x16xbf16>
    %39 = vector.shape_cast %38 : vector<2x1x4x16xbf16> to vector<2x4x16xbf16>
    %40 = vector.shape_cast %39 : vector<2x4x16xbf16> to vector<8x16xbf16>
    %cst_18 = arith.constant dense<0.000000e+00> : vector<8x8xf32>
    %41 = tpu.matmul %40, %7, %cst_18 {dimension_numbers = #tpu.dot_dimension_numbers<[1], [0], [0], [1], [0, 0, 1, 1], [], []>} : vector<8x16xbf16>, vector<16x8xbf16>, vector<8x8xf32> -> vector<8x8xf32>
    %42 = arith.addf %37, %41 : vector<8x8xf32>
    %43 = vector.extract_strided_slice %1 {offsets = [0, 3, 0, 8], sizes = [2, 1, 4, 16], strides = [1, 1, 1, 1]} : vector<2x6x4x24xbf16> to vector<2x1x4x16xbf16>
    %44 = vector.shape_cast %43 : vector<2x1x4x16xbf16> to vector<2x4x16xbf16>
    %45 = vector.shape_cast %44 : vector<2x4x16xbf16> to vector<8x16xbf16>
    %cst_19 = arith.constant dense<0.000000e+00> : vector<8x8xf32>
    %46 = tpu.matmul %45, %9, %cst_19 {dimension_numbers = #tpu.dot_dimension_numbers<[1], [0], [0], [1], [0, 0, 1, 1], [], []>} : vector<8x16xbf16>, vector<16x8xbf16>, vector<8x8xf32> -> vector<8x8xf32>
    %47 = arith.addf %42, %46 : vector<8x8xf32>
    %48 = arith.maximumf %28, %47 : vector<8x8xf32>
    %49 = vector.extract_strided_slice %1 {offsets = [0, 2, 0, 0], sizes = [2, 1, 4, 16], strides = [1, 1, 1, 1]} : vector<2x6x4x24xbf16> to vector<2x1x4x16xbf16>
    %50 = vector.shape_cast %49 : vector<2x1x4x16xbf16> to vector<2x4x16xbf16>
    %51 = vector.shape_cast %50 : vector<2x4x16xbf16> to vector<8x16xbf16>
    %cst_20 = arith.constant dense<0.000000e+00> : vector<8x8xf32>
    %52 = tpu.matmul %51, %3, %cst_20 {dimension_numbers = #tpu.dot_dimension_numbers<[1], [0], [0], [1], [0, 0, 1, 1], [], []>} : vector<8x16xbf16>, vector<16x8xbf16>, vector<8x8xf32> -> vector<8x8xf32>
    %53 = vector.extract_strided_slice %1 {offsets = [0, 3, 0, 0], sizes = [2, 1, 4, 16], strides = [1, 1, 1, 1]} : vector<2x6x4x24xbf16> to vector<2x1x4x16xbf16>
    %54 = vector.shape_cast %53 : vector<2x1x4x16xbf16> to vector<2x4x16xbf16>
    %55 = vector.shape_cast %54 : vector<2x4x16xbf16> to vector<8x16xbf16>
    %cst_21 = arith.constant dense<0.000000e+00> : vector<8x8xf32>
    %56 = tpu.matmul %55, %5, %cst_21 {dimension_numbers = #tpu.dot_dimension_numbers<[1], [0], [0], [1], [0, 0, 1, 1], [], []>} : vector<8x16xbf16>, vector<16x8xbf16>, vector<8x8xf32> -> vector<8x8xf32>
    %57 = arith.addf %52, %56 : vector<8x8xf32>
    %58 = vector.extract_strided_slice %1 {offsets = [0, 4, 0, 0], sizes = [2, 1, 4, 16], strides = [1, 1, 1, 1]} : vector<2x6x4x24xbf16> to vector<2x1x4x16xbf16>
    %59 = vector.shape_cast %58 : vector<2x1x4x16xbf16> to vector<2x4x16xbf16>
    %60 = vector.shape_cast %59 : vector<2x4x16xbf16> to vector<8x16xbf16>
    %cst_22 = arith.constant dense<0.000000e+00> : vector<8x8xf32>
    %61 = tpu.matmul %60, %7, %cst_22 {dimension_numbers = #tpu.dot_dimension_numbers<[1], [0], [0], [1], [0, 0, 1, 1], [], []>} : vector<8x16xbf16>, vector<16x8xbf16>, vector<8x8xf32> -> vector<8x8xf32>
    %62 = arith.addf %57, %61 : vector<8x8xf32>
    %63 = vector.extract_strided_slice %1 {offsets = [0, 5, 0, 0], sizes = [2, 1, 4, 16], strides = [1, 1, 1, 1]} : vector<2x6x4x24xbf16> to vector<2x1x4x16xbf16>
    %64 = vector.shape_cast %63 : vector<2x1x4x16xbf16> to vector<2x4x16xbf16>
    %65 = vector.shape_cast %64 : vector<2x4x16xbf16> to vector<8x16xbf16>
    %cst_23 = arith.constant dense<0.000000e+00> : vector<8x8xf32>
    %66 = tpu.matmul %65, %9, %cst_23 {dimension_numbers = #tpu.dot_dimension_numbers<[1], [0], [0], [1], [0, 0, 1, 1], [], []>} : vector<8x16xbf16>, vector<16x8xbf16>, vector<8x8xf32> -> vector<8x8xf32>
    %67 = arith.addf %62, %66 : vector<8x8xf32>
    %68 = arith.maximumf %48, %67 : vector<8x8xf32>
    %69 = vector.extract_strided_slice %1 {offsets = [0, 2, 0, 8], sizes = [2, 1, 4, 16], strides = [1, 1, 1, 1]} : vector<2x6x4x24xbf16> to vector<2x1x4x16xbf16>
    %70 = vector.shape_cast %69 : vector<2x1x4x16xbf16> to vector<2x4x16xbf16>
    %71 = vector.shape_cast %70 : vector<2x4x16xbf16> to vector<8x16xbf16>
    %cst_24 = arith.constant dense<0.000000e+00> : vector<8x8xf32>
    %72 = tpu.matmul %71, %3, %cst_24 {dimension_numbers = #tpu.dot_dimension_numbers<[1], [0], [0], [1], [0, 0, 1, 1], [], []>} : vector<8x16xbf16>, vector<16x8xbf16>, vector<8x8xf32> -> vector<8x8xf32>
    %73 = vector.extract_strided_slice %1 {offsets = [0, 3, 0, 8], sizes = [2, 1, 4, 16], strides = [1, 1, 1, 1]} : vector<2x6x4x24xbf16> to vector<2x1x4x16xbf16>
    %74 = vector.shape_cast %73 : vector<2x1x4x16xbf16> to vector<2x4x16xbf16>
    %75 = vector.shape_cast %74 : vector<2x4x16xbf16> to vector<8x16xbf16>
    %cst_25 = arith.constant dense<0.000000e+00> : vector<8x8xf32>
    %76 = tpu.matmul %75, %5, %cst_25 {dimension_numbers = #tpu.dot_dimension_numbers<[1], [0], [0], [1], [0, 0, 1, 1], [], []>} : vector<8x16xbf16>, vector<16x8xbf16>, vector<8x8xf32> -> vector<8x8xf32>
    %77 = arith.addf %72, %76 : vector<8x8xf32>
    %78 = vector.extract_strided_slice %1 {offsets = [0, 4, 0, 8], sizes = [2, 1, 4, 16], strides = [1, 1, 1, 1]} : vector<2x6x4x24xbf16> to vector<2x1x4x16xbf16>
    %79 = vector.shape_cast %78 : vector<2x1x4x16xbf16> to vector<2x4x16xbf16>
    %80 = vector.shape_cast %79 : vector<2x4x16xbf16> to vector<8x16xbf16>
    %cst_26 = arith.constant dense<0.000000e+00> : vector<8x8xf32>
    %81 = tpu.matmul %80, %7, %cst_26 {dimension_numbers = #tpu.dot_dimension_numbers<[1], [0], [0], [1], [0, 0, 1, 1], [], []>} : vector<8x16xbf16>, vector<16x8xbf16>, vector<8x8xf32> -> vector<8x8xf32>
    %82 = arith.addf %77, %81 : vector<8x8xf32>
    %83 = vector.extract_strided_slice %1 {offsets = [0, 5, 0, 8], sizes = [2, 1, 4, 16], strides = [1, 1, 1, 1]} : vector<2x6x4x24xbf16> to vector<2x1x4x16xbf16>
    %84 = vector.shape_cast %83 : vector<2x1x4x16xbf16> to vector<2x4x16xbf16>
    %85 = vector.shape_cast %84 : vector<2x4x16xbf16> to vector<8x16xbf16>
    %cst_27 = arith.constant dense<0.000000e+00> : vector<8x8xf32>
    %86 = tpu.matmul %85, %9, %cst_27 {dimension_numbers = #tpu.dot_dimension_numbers<[1], [0], [0], [1], [0, 0, 1, 1], [], []>} : vector<8x16xbf16>, vector<16x8xbf16>, vector<8x8xf32> -> vector<8x8xf32>
    %87 = arith.addf %82, %86 : vector<8x8xf32>
    %88 = arith.maximumf %68, %87 : vector<8x8xf32>
    %c0_28 = arith.constant 0 : index
    %c0_29 = arith.constant 0 : index
    %89 = vector.load %arg4[%c0_28, %c0_29] : memref<1x8xf32, #tpu.memory_space<vmem>>, vector<1x8xf32>
    %90 = vector.broadcast %89 : vector<1x8xf32> to vector<8x8xf32>
    %91 = arith.addf %88, %90 : vector<8x8xf32>
    %cst_30 = arith.constant 2.000000e-01 : f32
    %92 = vector.broadcast %cst_30 : f32 to vector<8x8xf32>
    %93 = arith.mulf %92, %91 : vector<8x8xf32>
    %94 = arith.maximumf %91, %93 : vector<8x8xf32>
    %95 = vector.shape_cast %94 : vector<8x8xf32> to vector<2x4x8xf32>
    %c0_31 = arith.constant 0 : index
    %c0_32 = arith.constant 0 : index
    %c0_33 = arith.constant 0 : index
    %c0_34 = arith.constant 0 : index
    %96 = vector.load %arg5[%c0_31, %c0_32, %c0_33, %c0_34] : memref<1x2x4x8xf32, #tpu.memory_space<vmem>>, vector<1x2x4x8xf32>
    %97 = vector.shape_cast %96 : vector<1x2x4x8xf32> to vector<2x4x8xf32>
    %98 = vector.shape_cast %95 : vector<2x4x8xf32> to vector<1x2x4x8xf32>
    tpu.vector_store %arg5[%c0_31, %c0_32, %c0_33, %c0_34], %98 {strides = array<i32>} : memref<1x2x4x8xf32, #tpu.memory_space<vmem>>, vector<1x2x4x8xf32>,
    return
  }
  func.func @transform_0(%arg0: i32, %arg1: i32) -> (i32, i32, i32, i32, i32) {
    %c0_i32 = arith.constant 0 : i32
    %c0_i32_0 = arith.constant 0 : i32
    %c0_i32_1 = arith.constant 0 : i32
    %c0_i32_2 = arith.constant 0 : i32
    return %arg0, %arg1, %c0_i32, %c0_i32_0, %c0_i32_1 : i32, i32, i32, i32, i32
  }
  func.func @transform_1(%arg0: i32, %arg1: i32) -> (i32, i32, i32) {
    %c0_i32 = arith.constant 0 : i32
    %c0_i32_0 = arith.constant 0 : i32
    %c0_i32_1 = arith.constant 0 : i32
    %c0_i32_2 = arith.constant 0 : i32
    return %c0_i32, %c0_i32_0, %c0_i32_1 : i32, i32, i32
  }
  func.func @transform_2(%arg0: i32, %arg1: i32) -> (i32, i32) {
    %c0_i32 = arith.constant 0 : i32
    %c0_i32_0 = arith.constant 0 : i32
    %c0_i32_1 = arith.constant 0 : i32
    return %c0_i32, %c0_i32_0 : i32, i32
  }
  func.func @transform_3(%arg0: i32, %arg1: i32) -> (i32, i32, i32, i32) {
    %c0_i32 = arith.constant 0 : i32
    %c0_i32_0 = arith.constant 0 : i32
    %c0_i32_1 = arith.constant 0 : i32
    return %arg0, %arg1, %c0_i32, %c0_i32_0 : i32, i32, i32, i32
  }
}

</mosaic_0001>

<bundles_post_ra>
// kernel: tpu_custom_call.1
= control target key start
LH: loop header
LB: loop body
LE: loop exit
PB: predicated region body
PF: predicated region fallthrough
CT: control target
= control target key end

     0   :  { %8 = vsyncpa [#allocation3], 0  ;;  %s1913_s0 = inlined_call_operand.hbm [shape: bf16[2,4,6,4,24], index: 0, kind: input, shape index: {}]   ;;  %s1914_s1 = inlined_call_operand.vmem [shape: bf16[4,16,8], index: 1, kind: input, shape index: {}]   ;;  %s1915_s2 = inlined_call_operand.vmem [shape: f32[1,8], index: 2, kind: input, shape index: {}]   ;;  %s1916_s3 = inlined_call_operand.hbm [shape: f32[2,4,4,8], index: 3, kind: output, shape index: {}]  }
   0x1   :  { %10 = vsyncpa [#allocation3 + $0x1], 0 }
   0x2   :  { %11 = vsyncpa [#allocation4], 0 }
   0x3   :  { %13 = vsyncpa [#allocation4 + $0x1], 0  ;;  %s1618_s12 = smov 0   ;;  %s1620_s13 = smov 0  }
   0x4   :  { %s1622_s14 = smov 0   ;;  %s1624_s15 = smov 0  }
   0x5   :  { %s1626_s16 = smov 0   ;;  %s1628_s17 = smov 0  }
   0x6   :  { %s1630_s18 = smov 0   ;;  %s1632_s19 = smov 0  }
   0x7 LB: > { %s1140_s20 = sadd.s32 4294967295, %s1586_s19   ;;  %s1141_s21 = sadd.s32 4294967294, %s1586_s19   ;;  %s1586_s19 = sphi %s1632_s19, %s19_s19   ;;  %s1582_s18 = sphi %s1630_s18, %s1934_s18   ;;  %s1578_s17 = sphi %s1628_s17, %s1933_s17   ;;  %s1574_s16 = sphi %s1626_s16, %s1932_s16   ;;  %s1570_s15 = sphi %s1624_s15, %s1931_s15   ;;  %s1566_s14 = sphi %s1622_s14, %s1930_s14   ;;  %s1562_s13 = sphi %s1620_s13, %s1929_s13   ;;  %s1558_s12 = sphi %s1618_s12, %s1928_s12  }
   0x8   : > { %s28_s22 = sadd.s32 1, %s1578_s17  ;;  %s31_s23 = sadd.s32 1, %s1582_s18 }
   0x9   : > { %p29_p0 = scmp.ge.s32.totalorder %s28_s22, 2  ;;  %s40_s24 = sadd.s32 1, %s1566_s14 }
   0xa   : > { %p47_p1 = scmp.ne.s32.totalorder %s1566_s14, %s1562_s13  ;;  %p48_p2 = scmp.eq.s32.totalorder %s1586_s19, 0 }
   0xb   : > { %s1936_s22 = smov (%p29_p0, %s28_s22), 0  ;;  %s1938_s23 = smov (!%p29_p0, %s31_s23), %s1582_s18 }
   0xc   : > { %s36_s25 = ssub.s32 %s1578_s17, %s1936_s22  ;;  %p1671_p3 = por %p48_p2, %p47_p1 }
   0xd   : > { %p33_p4 = scmp.ge.s32.totalorder %s1938_s23, 2  ;;  %p53_p5 = scmp.ne.s32.totalorder %s1562_s13, %s1558_s12 }
   0xe   : > { %p54_p6 = scmp.eq.s32.totalorder %s1140_s20, 0  ;;  %p121_p7 = scmp.eq.s32.totalorder %s1140_s20, 3 }
   0xf   : > { %s1940_s23 = smov (%p33_p4, %s1938_s23), 0  ;;  %p127_p10 = scmp.eq.s32.totalorder %s1141_s21, 3 }
  0x10   : > { %1920 = sst [smem:[#allocation8_spill]] %s1940_s23  ;;  %p1679_p8 = por %p54_p6, %p53_p5 }
  0x11   : > { %p1683_p9 = por %p121_p7, %p47_p1  ;;  %s35_s29 = ssub.s32 %s1582_s18, %s1940_s23 }
  0x12   : > { %s37_s30 = sor.u32 %s36_s25, %s35_s29  ;;  %p1689_p12 = por %p127_p10, %p53_p5 }
  0x13   : > { %s1922_s28 = scalar_select %p1683_p9, 1, 0 }
  0x14   : > { %p38_p11 = scmp.eq.s32.totalorder %s37_s30, 0  ;;  %p1374_p13 = scmp.lt.s32.totalorder %s1586_s19, 4 }
  0x15   : > { %s1923_s4 = scalar_select %p1689_p12, 1, 0 }
  0x16   : > { %s153_s5 = sand.u32 1, %s1566_s14   ;;  %s1359_s8 = smul.u32 12, %s1578_s17 }
  0x17   : > { %s1696_s6 = scalar_select %p38_p11, %s1566_s14, %s40_s24  }
  0x18   : > { %s1358_s7 = smul.u32 24, %s153_s5  ;;  %p1701_p0 = pnand %p1374_p13, %p1671_p3 }
  0x19   : > { %s1360_s10 = smul.u32 24, %s1582_s18  ;;  %s1713_s26 = scalar_lea.sflag [#allocation3], %s153_s5 }
  0x1a   : > { %s157_s11 = scalar_lea.vmem [#allocation2], %s1358_s7  ;;  %p1460_p2 = pneg %p1701_p0 }
  0x1b   : > { %s167_s20 = sshll.u32 %s157_s11, 4  ;;  %s164_s21 = sadd.s32 %s1360_s10, %s1359_s8  ;;  %s1706_s20 = int_to_ptr.vmem [resolvable:$true] %s167_s20 }
  0x1c   : > { %s1146_s25 = sshll.u32 %s164_s21, 5  ;;  %s1463_s10 = scalar_lea.hbm %s1913_s0, 1536 }
  0x1d   : > { %s1711_s24 = scalar_lea.hbm %s1913_s0, %s1146_s25 }
  0x1e   : > { %s1458_s23 = scalar_lea.hbm %s1711_s24, 384  ;;  %p1464_p5 = scmp.lt.u32.totalorder %s1711_s24, %s1913_s0 }
  0x1f   : > { %p1459_p1 = scmp.ne.s32.totalorder %s1711_s24, %s1458_s23  ;;  %p1465_p6 = scmp.lt.u32.totalorder %s1463_s10, %s1458_s23 }
  0x20   : > { %p1467_p10 = scmp.lt.u32.totalorder %s1458_s23, %s1711_s24 }
  0x21   : > { %p1461_p3 = pnand %p1460_p2, %p1459_p1  ;;  %p1466_p7 = por %p1465_p6, %p1464_p5 }
  0x23   : > { %p1462_p4 = pneg %p1461_p3  ;;  %p1468_p11 = por %p1467_p10, %p1466_p7 }
  0x25   : > { %p1469_p13 = pnand %p1468_p11, %p1462_p4 }
  0x27   : > { %1472 = shalt.err (!%p1469_p13)
}
  0x28   : > { %s1473_s5 = scalar_lea.vmem %s1706_s20, 384  ;;  %s1588_s25 = smov [#allocation2]  }
  0x29   : > { %p1474_p1 = scmp.ne.s32.totalorder %s1706_s20, %s1473_s5  ;;  %s1478_s29 = sshll.u32 %s1588_s25, 4  ;;  %s1479_s29 = int_to_ptr.vmem [resolvable:$false] %s1478_s29 }
  0x2a   : > { %s1480_s30 = scalar_lea.vmem %s1479_s29, 768  ;;  %p1481_p9 = scmp.lt.s32.totalorder %s1706_s20, %s1479_s29 }
  0x2b   : > { %p1476_p3 = pnand %p1474_p1, %p1460_p2  ;;  %p1482_p5 = scmp.lt.s32.totalorder %s1480_s30, %s1473_s5 }
  0x2d   : > { %p1477_p12 = pneg %p1476_p3  ;;  %p1483_p6 = por %p1482_p5, %p1481_p9 }
  0x2f   : > { %p1484_p7 = pnand %p1483_p6, %p1477_p12 }
  0x31   : > { %1487 = shalt.err (!%p1484_p7)
}
  0x32   : > { %s1589_s23 = smov 32   ;;  %s1590_s7 = smov 2  }
  0x33   : > { %1369 = dma.hbm_to_vmem [thread:$0]  (!%p1701_p0), %s1711_s24, 384, %s1706_s20, %s1713_s26, %s1589_s23, %s1589_s23, %s1590_s7  }
  0x34   : > { %p1147_p2 = scmp.ge.s32.totalorder %s1586_s19, 1  ;;  %p175_p4 = scmp.lt.s32.totalorder %s1586_s19, 5 }
  0x36   : > { %p176_p10 = pnand %p1147_p2, %p175_p4 }
  0x37   : > { %s1744_s8 = sand.u32 (!%p176_p10), 1, %s1562_s13  }
  0x38   : > { %179 = sbr.rel (%p176_p10) target bundleno = 505 (0x1f9), region = 32  ;;  %s182_s11 = scalar_lea.sflag (!%p176_p10), [#allocation3], %s1744_s8 }
  0x39   : > { %s1361_s10 = smul.u32 (!%p176_p10), 24, %s1744_s8 }
  0x3b   : > { %s1748_s21 = scalar_lea.vmem (!%p176_p10), [#allocation2], %s1361_s10 }
  0x3f   : > { %1549 = dma.done.wait (%p1679_p8), %s182_s11, 384  }
  0x40   : > { %1551 = vsyncadd (%p1679_p8), %s182_s11, 4294966912  ;;  %v240_v0 = vlaneseq  ;;  %v1591_v1 = vmov 1983009808   ;;  %v1592_v3 = vmov 0.0   ;;  %vm1593_vm0 = vmmov 0   ;;  %v1764_v8 = vld [vmem:[%s1914_s1 + $0x8] sm:$0xff]  }
  0x41   : > { %v238_v2 = vunpack.c.l.s4 %v1591_v1  ;;  %1214 = vmatprep.subr.bf16.mxu0 %v1592_v3  ;;  %1216 = vmatprep.mubr.msk.bf16.mxu0 %vm1593_vm0, %v1592_v3  ;;  %v1448_v7 = vld [vmem:[%s1748_s21 + $0x2] ss:$12 sps:$4 sm:$0x33]   ;;  %v1449_v9 = vld [vmem:[%s1748_s21] ss:$12 sps:$4 sm:$0x33]  }
  0x42   : > { %v241_v4 = vshrl.u32 %v240_v0, 7  ;;  %1238 = vmatprep.subr.bf16.mxu1 %v1592_v3  ;;  %1240 = vmatprep.mubr.msk.bf16.mxu1 %vm1593_vm0, %v1592_v3  ;;  %vm250_vm1 = vcmask 130048   ;;  %v1450_v11 = vld [vmem:[%s1748_s21 + $0x4] ss:$12 sps:$4 sm:$0x33]   ;;  %s1594_s26 = smov 120  }
  0x43   : > { %v239_v5 = vunpack.c.0.s8 %v238_v2  ;;  %1215 = vmatpush3.bf16.msra.mxu0 %v1764_v8  ;;  %v1772_v12 = vld [vmem:[%s1914_s1] sm:$0xff]   ;;  %1239 = vmatpush3.bf16.msra.mxu1 %v1764_v8  ;;  %v1456_v21 = vld [vmem:[%s1914_s1 + $0x10] sm:$0xff]   ;;  %v1457_v22 = vld [vmem:[%s1914_s1 + $0x18] sm:$0xff]   ;;  %s1148_s23 = sshll.u32 %s1744_s8, 3  ;;  %s1177_s7 = sshll.u32 %s1570_s15, 1  ;;  %vm1031_vm2 = vcmask 60416  }
  0x44   : > { %1220 = vmatprep.subr.bf16.mxu0 %v1592_v3  ;;  %1244 = vmatprep.subr.bf16.mxu1 %v1592_v3  ;;  %v1451_v15 = vld [vmem:[%s1748_s21 + $0x6] ss:$12 sps:$4 sm:$0x33]   ;;  %v1452_v16 = vld [vmem:[%s1748_s21 + $0x8] ss:$12 sps:$4 sm:$0x33]  }
  0x45   : > { %v242_v6 = vsub.s32 %v239_v5, %v241_v4  ;;  %v1454_v18 = vld [vmem:[%s1748_s21 + $0xa] ss:$12 sps:$4 sm:$0x33]   ;;  %s1178_s10 = sshll.u32 %s1574_s16, 2  ;;  %v1175_v44 = vld [vmem:[%s1915_s2] ss:$0 sm:$0xff] }
  0x46   : > { %s1047_s27 = sadd.s32 %s1178_s10, %s1177_s7  ;;  %s207_s20 = scalar_lea.vmem [#allocation5], %s1148_s23 }
  0x47   : > { %v243_v10 = vrot.slane %v1448_v7, %v242_v6  ;;  %v303_v13 = vrot.slane %v1449_v9, %v242_v6  ;;  %v362_v14 = vrot.slane %v1450_v11, %v242_v6  ;;  %v422_v17 = vrot.slane %v1451_v15, %v242_v6  ;;  %s1179_s9 = sshll.u32 %s1047_s27, 6  ;;  %s1050_s24 = sshll.u32 %s207_s20, 4  ;;  %s1859_s24 = int_to_ptr.vmem [resolvable:$true] %s1050_s24 }
  0x48   : > { %v745_v19 = vrot.slane %v1452_v16, %v242_v6  ;;  %v799_v20 = vrot.slane %v1454_v18, %v242_v6  ;;  %s1035_s5 = scalar_lea.sflag [#allocation4], %s1744_s8  ;;  %s1488_s25 = scalar_lea.vmem %s1859_s24, 128 }
  0x49   : > { %473 = vrot.lane.b32.xlu0 %v243_v10, %s1594_s26  ;;  %1217 = vmatmul.mubr.msk.bf16.vlgmr.msra.gmra.mrb[0].mxu0 %vm250_vm1, %v243_v10  ;;  %p1489_p8 = scmp.ne.s32.totalorder %s1859_s24, %s1488_s25  ;;  %p1925_p9 = scmp.ne.s32.totalorder %s1922_s28, 0 }
  0x4a   : > { %563 = vrot.lane.b32.xlu1 %v362_v14, %s1594_s26  ;;  %1221 = vmatpush3.bf16.msra.mxu0 %v1772_v12  ;;  %s1595_s29 = smov [#allocation5]  }
  0x4b   : > { %1222 = vmatprep.mubr.msk.bf16.mxu0 %vm1593_vm0, %v1592_v3  ;;  %1226 = vmatprep.subr.bf16.mxu0 %v1592_v3  ;;  %p1490_p12 = pnand %p1489_p8, %p1925_p9  ;;  %s1492_s30 = sshll.u32 %s1595_s29, 4  ;;  %s1493_s30 = int_to_ptr.vmem [resolvable:$false] %s1492_s30 }
  0x4c   : > { %s1494_s23 = scalar_lea.vmem %s1493_s30, 256  ;;  %p1495_p11 = scmp.lt.s32.totalorder %s1859_s24, %s1493_s30 }
  0x4d   : > { %518 = vrot.lane.b32.xlu0 %v303_v13, %s1594_s26  ;;  %p1491_p0 = pneg %p1490_p12  ;;  %p1496_p13 = scmp.lt.s32.totalorder %s1494_s23, %s1488_s25 }
  0x4e   : > { %609 = vrot.lane.b32.xlu1 %v422_v17, %s1594_s26 }
  0x4f   : > { %p1497_p1 = por %p1496_p13, %p1495_p11 }
  0x51   : > { %925 = vrot.lane.b32.xlu0 %v745_v19, %s1594_s26  ;;  %p1498_p3 = pnand %p1497_p1, %p1491_p0 }
  0x52   : > { %971 = vrot.lane.b32.xlu1 %v799_v20, %s1594_s26  ;;  %s1857_s26 = scalar_lea.hbm %s1916_s3, %s1179_s9 }
  0x55   : > { %1223 = vmatmul.mubr.msk.bf16.vlgmr.msra.gmra.mrb[0].mxu0 %vm250_vm1, %v303_v13 }
  0x56   : > { %1227 = vmatpush3.bf16.msra.mxu0 %v1456_v21  ;;  %1228 = vmatprep.mubr.msk.bf16.mxu0 %vm1593_vm0, %v1592_v3 }
  0x57   : > { %1232 = vmatprep.subr.bf16.mxu0 %v1592_v3 }
  0x61   : > { %1229 = vmatmul.mubr.msk.bf16.vlgmr.msra.gmra.mrb[0].mxu0 %vm250_vm1, %v362_v14 }
  0x62   : > { %1233 = vmatpush3.bf16.msra.mxu0 %v1457_v22  ;;  %1234 = vmatprep.mubr.msk.bf16.mxu0 %vm1593_vm0, %v1592_v3 }
  0x63   : > { %1262 = vmatprep.subr.bf16.mxu0 %v1592_v3 }
  0x6d   : > { %1235 = vmatmul.mubr.msk.bf16.vlgmr.msra.gmra.mrb[0].mxu0 %vm250_vm1, %v422_v17 }
  0x6e   : > { %1263 = vmatpush3.bf16.msra.mxu0 %v1764_v8  ;;  %1264 = vmatprep.mubr.msk.bf16.mxu0 %vm1593_vm0, %v1592_v3 }
  0x6f   : > { %1268 = vmatprep.subr.bf16.mxu0 %v1592_v3 }
  0x75   : > { %1265 = vmatmul.mubr.msk.bf16.vlgmr.msra.gmra.mrb[4].mxu0 %vm250_vm1, %v422_v17 }
  0x76   : > { %1269 = vmatpush3.bf16.msra.mxu0 %v1772_v12  ;;  %1270 = vmatprep.mubr.msk.bf16.mxu0 %vm1593_vm0, %v1592_v3 }
  0x77   : > { %1274 = vmatprep.subr.bf16.mxu0 %v1592_v3 }
  0x81   : > { %1271 = vmatmul.mubr.msk.bf16.vlgmr.msra.gmra.mrb[4].mxu0 %vm250_vm1, %v362_v14 }
  0x82   : > { %1275 = vmatpush3.bf16.msra.mxu0 %v1456_v21  ;;  %1276 = vmatprep.mubr.msk.bf16.mxu0 %vm1593_vm0, %v1592_v3 }
  0x83   : > { %1280 = vmatprep.subr.bf16.mxu0 %v1592_v3 }
  0x8d   : > { %1277 = vmatmul.mubr.msk.bf16.vlgmr.msra.gmra.mrb[4].mxu0 %vm250_vm1, %v745_v19 }
  0x8e   : > { %1281 = vmatpush3.bf16.msra.mxu0 %v1457_v22  ;;  %1282 = vmatprep.mubr.msk.bf16.mxu0 %vm1593_vm0, %v1592_v3 }
  0x99   : > { %1283 = vmatmul.mubr.msk.bf16.vlgmr.msra.gmra.mrb[4].mxu0 %vm250_vm1, %v799_v20 }
  0xbb   : > { %v474_v23 = vpop.permute.xlu0 %473 }
  0xbc   : > { %1241 = vmatmul.mubr.msk.bf16.vlgmr.msra.gmra.mrb[0].mxu1 %vm250_vm1, %v474_v23  ;;  %v564_v25 = vpop.permute.xlu1 %563 }
  0xbd   : > { %1245 = vmatpush3.bf16.msra.mxu1 %v1772_v12  ;;  %1246 = vmatprep.mubr.msk.bf16.mxu1 %vm1593_vm0, %v1592_v3 }
  0xbe   : > { %1250 = vmatprep.subr.bf16.mxu1 %v1592_v3 }
  0xbf   : > { %v519_v24 = vpop.permute.xlu0 %518 }
  0xc0   : > { %v610_v26 = vpop.permute.xlu1 %609 }
  0xc3   : > { %v926_v27 = vpop.permute.xlu0 %925 }
  0xc4   : > { %v972_v28 = vpop.permute.xlu1 %971 }
  0xc8   : > { %1247 = vmatmul.mubr.msk.bf16.vlgmr.msra.gmra.mrb[0].mxu1 %vm250_vm1, %v519_v24 }
  0xc9   : > { %1251 = vmatpush3.bf16.msra.mxu1 %v1456_v21  ;;  %1252 = vmatprep.mubr.msk.bf16.mxu1 %vm1593_vm0, %v1592_v3 }
  0xca   : > { %1256 = vmatprep.subr.bf16.mxu1 %v1592_v3 }
  0xd4   : > { %1253 = vmatmul.mubr.msk.bf16.vlgmr.msra.gmra.mrb[0].mxu1 %vm250_vm1, %v564_v25 }
  0xd5   : > { %1257 = vmatpush3.bf16.msra.mxu1 %v1457_v22  ;;  %1258 = vmatprep.mubr.msk.bf16.mxu1 %vm1593_vm0, %v1592_v3 }
  0xd6   : > { %1286 = vmatprep.subr.bf16.mxu1 %v1592_v3 }
  0xe0   : > { %1259 = vmatmul.mubr.msk.bf16.vlgmr.msra.gmra.mrb[0].mxu1 %vm250_vm1, %v610_v26 }
  0xe1   : > { %1287 = vmatpush3.bf16.msra.mxu1 %v1764_v8  ;;  %1288 = vmatprep.mubr.msk.bf16.mxu1 %vm1593_vm0, %v1592_v3 }
  0xe2   : > { %1292 = vmatprep.subr.bf16.mxu1 %v1592_v3 }
  0xe8   : > { %1289 = vmatmul.mubr.msk.bf16.vlgmr.msra.gmra.mrb[4].mxu1 %vm250_vm1, %v610_v26 }
  0xe9   : > { %1293 = vmatpush3.bf16.msra.mxu1 %v1772_v12  ;;  %1294 = vmatprep.mubr.msk.bf16.mxu1 %vm1593_vm0, %v1592_v3 }
  0xea   : > { %1298 = vmatprep.subr.bf16.mxu1 %v1592_v3 }
  0xf4   : > { %1295 = vmatmul.mubr.msk.bf16.vlgmr.msra.gmra.mrb[4].mxu1 %vm250_vm1, %v564_v25 }
  0xf5   : > { %1299 = vmatpush3.bf16.msra.mxu1 %v1456_v21  ;;  %1300 = vmatprep.mubr.msk.bf16.mxu1 %vm1593_vm0, %v1592_v3 }
  0xf6   : > { %1304 = vmatprep.subr.bf16.mxu1 %v1592_v3 }
 0x100   : > { %1301 = vmatmul.mubr.msk.bf16.vlgmr.msra.gmra.mrb[4].mxu1 %vm250_vm1, %v926_v27 }
 0x101   : > { %1305 = vmatpush3.bf16.msra.mxu1 %v1457_v22  ;;  %1306 = vmatprep.mubr.msk.bf16.mxu1 %vm1593_vm0, %v1592_v3 }
 0x10c   : > { %1307 = vmatmul.mubr.msk.bf16.vlgmr.msra.gmra.mrb[4].mxu1 %vm250_vm1, %v972_v28 }
 0x140   : > { %v466_v29 = vpop.f32.mrb[0].mxu0 }
 0x141   : > { %v1236_v30 = vpop.f32.mrb[1].mxu0 }
 0x142   : > { %v469_v31 = vpop.f32.mrb[2].mxu0 }
 0x143   : > { %v1237_v32 = vpop.f32.mrb[3].mxu0 }
 0x16c   : > { %v837_v33 = vpop.f32.mrb[4].mxu0 }
 0x16d   : > { %v1284_v34 = vpop.f32.mrb[5].mxu0 }
 0x16e   : > { %v840_v35 = vpop.f32.mrb[6].mxu0 }
 0x16f   : > { %v1285_v36 = vpop.f32.mrb[7].mxu0 }
 0x1b3   : > { %v648_v37 = vpop.f32.mrb[0].mxu1 }
 0x1b4   : > { %v655_v38 = vmax.f32 %v466_v29, %v648_v37  ;;  %v1260_v39 = vpop.f32.mrb[1].mxu1 }
 0x1b5   : > { %v651_v40 = vpop.f32.mrb[2].mxu1 }
 0x1b6   : > { %v844_v41 = vmax.f32 %v655_v38, %v837_v33  ;;  %v1261_v42 = vpop.f32.mrb[3].mxu1 }
 0x1df   : > { %v1010_v43 = vpop.f32.mrb[4].mxu1 }
 0x1e0   : > { %v1017_v45 = vmax.f32 %v844_v41, %v1010_v43  ;;  %v1308_v46 = vpop.f32.mrb[5].mxu1 }
 0x1e1   : > { %v1013_v47 = vpop.f32.mrb[6].mxu1 }
 0x1e2   : > { %v1025_v48 = vadd.f32 %v1175_v44, %v1017_v45  ;;  %v1309_v49 = vpop.f32.mrb[7].mxu1 }
 0x1e4   : > { %v1026_v50 = vmul.f32 0.2, %v1025_v48 }
 0x1e6   : > { %v1027_v51 = vmax.f32 %v1025_v48, %v1026_v50 }
 0x1e8   : > { %v1029_v52 = vcombine.high %v1027_v51, %v1027_v51  ;;  %1032 = vst.msk [vmem:[%s207_s20] sm:$0xf] %vm1031_vm2, %v1027_v51 }
 0x1ea   : > { %1033 = vst.msk [vmem:[%s207_s20 + $0x4] sm:$0xf] %vm1031_vm2, %v1029_v52 }
 0x1eb   : > { %1501 = shalt.err (!%p1498_p3)
}
 0x1ec   : > { %s1502_s7 = scalar_lea.hbm %s1857_s26, 128  ;;  %s1506_s21 = scalar_lea.hbm %s1916_s3, 512 }
 0x1ed   : > { %p1503_p5 = scmp.ne.s32.totalorder %s1857_s26, %s1502_s7  ;;  %p1507_p2 = scmp.lt.u32.totalorder %s1857_s26, %s1916_s3 }
 0x1ee   : > { %p1508_p4 = scmp.lt.u32.totalorder %s1506_s21, %s1502_s7  ;;  %p1510_p8 = scmp.lt.u32.totalorder %s1502_s7, %s1857_s26 }
 0x1ef   : > { %p1504_p6 = pnand %p1503_p5, %p1925_p9 }
 0x1f0   : > { %p1509_p10 = por %p1508_p4, %p1507_p2 }
 0x1f1   : > { %p1505_p7 = pneg %p1504_p6 }
 0x1f2   : > { %p1511_p12 = por %p1510_p8, %p1509_p10 }
 0x1f4   : > { %p1512_p0 = pnand %p1511_p12, %p1505_p7 }
 0x1f6   : > { %1515 = shalt.err (!%p1512_p0)
}
 0x1f7   : > { %s1596_s20 = smov 64   ;;  %s1597_s15 = smov 4  }
 0x1f8   : > { %1364 = dma.vmem_to_hbm [thread:$0]  (%p1925_p9), %s1859_s24, 128, %s1857_s26, %s1035_s5, %s1596_s20, %s1596_s20, %s1597_s15  }
 0x1f9 PF: > { %p1375_p11 = scmp.ge.s32.totalorder %s1586_s19, 2  ;;  %s1065_s16 = sand.u32 1, %s1558_s12  }
 0x1fa   : > { %p1926_p13 = scmp.ne.s32.totalorder %s1923_s4, 0  ;;  %s1066_s25 = scalar_lea.sflag [#allocation4], %s1065_s16 }
 0x1fc   : > { %p1371_p1 = pnand %p1375_p11, %p1926_p13 }
 0x1fe   : > { %1553 = dma.done.wait (!%p1371_p1), %s1066_s25, 128  }
 0x1ff   : > { %1555 = vsyncadd (!%p1371_p1), %s1066_s25, 4294967168  ;;  %s19_s19 = sadd.s32 1, %s1586_s19   ;;  %s1927_s28 = sld [smem:[#allocation8_spill]] }
 0x200   : > { %p16_p3 = scmp.ge.s32.totalorder %s19_s19, 6   ;;  %s1928_s12 = smov %s1562_s13 }
 0x201   : > { %s1929_s13 = smov %s1566_s14  ;;  %s1930_s14 = smov %s1696_s6 }
 0x202   : > { %s1931_s15 = smov %s1578_s17  ;;  %s1932_s16 = smov %s1582_s18 }
 0x203   : > { %s1933_s17 = smov %s1936_s22  ;;  %18 = sbr.rel (!%p16_p3) target bundleno = 7 (0x7), region = 80 }
 0x205   : > { %s1934_s18 = smov %s1927_s28 }
 0x20a   :  { %1071 = vsyncpa [#allocation3], 1 }
 0x20b   :  { %1073 = vsyncpa [#allocation3 + $0x1], 1 }
 0x20c   :  { %1074 = vsyncpa [#allocation4], 1 }
 0x20d   :  { %1076 = vsyncpa [#allocation4 + $0x1], 1 }

</bundles_post_ra>
